<compile_context>
chip_gen: v7x
topology: tpu7x:2x2x1
jax: 0.10.0
libtpu: 0.0.40
codegen_flags: <defaults>
</compile_context>

<pallas_src>
import functools

import jax
import jax.numpy as jnp
from jax import lax
from jax.experimental import pallas as pl
from jax.experimental.pallas import tpu as pltpu

# 5x5 flat positions receiving +w and -w in the RDC scatter, paired index-by-index.
_POS_5X5 = (0, 2, 4, 10, 14, 20, 22, 24)
_NEG_5X5 = (6, 7, 8, 11, 13, 16, 17, 18)
_LANES = 128
_SUBLANES = 8
_TL_TARGET = 2048  # target output lane-tile width (columns); multiple of 128


def _round_up(x, m):
    return (x + m - 1) // m * m


def _rdc_kernel(x_hbm, w_ref, b_ref, o_ref, xbuf, sem, col_ref, *,
                pair_offsets, c_pad, tl, tl_in, nt):
    """One grid step = one (image n, lane-tile t) output block.

    x_hbm  : (N, c_pad, flat_len) HBM ref (memory_space=ANY), flat padded images
    w_ref  : (C_out, 8*c_pad)     folded +/- tap weights (tap-major, channel-minor)
    b_ref  : (C_out, 1)           f32 bias
    o_ref  : (C_out, tl)          output lane tile (batch dim squeezed away)
    xbuf   : (2, c_pad, tl_in)    double-buffered halo'd input tile (VMEM scratch)
    sem    : (2,)                 DMA semaphores
    col_ref: (8*c_pad, tl)        im2col of the 8 difference taps (VMEM scratch)
    """
    n = pl.program_id(0)
    t = pl.program_id(1)
    slot = t & 1

    def start_fetch(tile, slot_):
        start = pl.multiple_of(tile * tl, _LANES)
        pltpu.make_async_copy(
            x_hbm.at[n, :, pl.ds(start, tl_in)],
            xbuf.at[slot_],
            sem.at[slot_],
        ).start()

    # Prime the per-image pipeline: the first tile of each image is fetched here.
    @pl.when(t == 0)
    def _():
        start_fetch(0, 0)

    # Wait for the current tile's DMA (started here for t==0, prefetched last step otherwise).
    pltpu.make_async_copy(
        x_hbm.at[0, :, pl.ds(0, tl_in)], xbuf.at[slot], sem.at[slot],
    ).wait()

    # Prefetch the next tile of the same image; overlaps with the compute below.
    @pl.when(t + 1 < nt)
    def _():
        start_fetch(t + 1, 1 - slot)

    xv = xbuf.at[slot]  # (c_pad, tl_in) VMEM view, no load yet

    # im2col of the 8 +/- difference taps: each tap is a pair of static lane slices; the
    # diff is stored straight into an aligned c_pad-sublane strip of the scratch (no
    # concatenate copy, only one diff temporary live at a time).
    for j, (op, on) in enumerate(pair_offsets):
        col_ref[j * c_pad:(j + 1) * c_pad, :] = xv[:, op:op + tl] - xv[:, on:on + tl]

    # Single fused MXU contraction over all taps and channels (K = 8*c_pad), f32 accumulate.
    out = jnp.dot(w_ref[...], col_ref[...], preferred_element_type=jnp.float32)
    o_ref[...] = (out + b_ref[...]).astype(o_ref.dtype)


def make_rdc_buffer(weight):
    """Build the scattered 5x5 'buffer' kernel from the 3x3 weight (reference path only)."""
    O, I = weight.shape[0], weight.shape[1]
    w_flat = weight.reshape(O, I, 9)
    w8 = w_flat[:, :, 1:]                                        # (O, I, 8)
    buf = jnp.zeros((O, I, 25), weight.dtype)
    buf = buf.at[:, :, jnp.array(_POS_5X5)].set(w8)
    buf = buf.at[:, :, jnp.array(_NEG_5X5)].set(-w8)
    return buf.reshape(O, I, 5, 5)                               # OIHW


def rdc_forward(x_nchw, weight_3x3, bias, *, stride=1, padding=2, dilation=1,
                groups=1, compute_dtype=None):
    """RDC forward. x: (N, C_in, H, W) float32 -> (N, C_out, H, W)."""
    if stride != 1 or dilation != 1 or groups != 1:
        # TODO(synk): generalize the flat-offset scheme to stride/dilation/groups != 1.
        raise NotImplementedError("rdc_forward supports only stride=dilation=groups=1")

    N, C_in, H, W = x_nchw.shape
    C_out = weight_3x3.shape[0]
    Hp, Wp = H + 2 * padding, W + 2 * padding
    c_pad = max(_SUBLANES, _round_up(C_in, _SUBLANES))           # sublane-aligned channels

    # Flat geometry: output pixel (h, w) lives at column p = h*Wp + w of the flattened
    # padded image; 5x5 tap (kh, kw) reads column p + kh*Wp + kw.
    max_off = 4 * Wp + 4
    halo = _round_up(max_off, _LANES)
    # Lane-tile width: whole image when small, else ~_TL_TARGET (and >= 2*halo so the
    # halo'd input tile is not dominated by its halo).
    tl = _round_up(min(H * Wp, max(_TL_TARGET, 2 * halo)), _LANES)
    tl_in = tl + halo
    nt = -(-(H * Wp) // tl)

    # Flat columns the kernel may touch; a single merged pad covers the channel pad, the
    # spatial halo, and the tail needed by the last tile (no second flat pad / HBM copy).
    needed = max(Hp * Wp, (nt - 1) * tl + tl_in)
    h_ext = -(-needed // Wp)
    flat_len = h_ext * Wp
    # VMEM refs have no runtime bounds check -> keep this invariant explicit.
    assert flat_len >= (nt - 1) * tl + tl_in and flat_len >= Hp * Wp
    pad_bottom = h_ext - padding - H
    x_flat = jnp.pad(
        x_nchw,
        ((0, 0), (0, c_pad - C_in), (padding, pad_bottom), (padding, padding)),
    ).reshape(N, c_pad, flat_len)

    # Fold the +/- scatter: only the 8 off-centre 3x3 taps carry weight; zero-pad the
    # channel axis so weight columns line up with the sublane-aligned im2col strips.
    w8 = weight_3x3.reshape(C_out, C_in, 9)[:, :, 1:]            # (O, I, 8)
    w8 = jnp.pad(w8, ((0, 0), (0, c_pad - C_in), (0, 0)))        # (O, c_pad, 8)
    w2d = jnp.transpose(w8, (0, 2, 1)).reshape(C_out, 8 * c_pad)
    b2d = bias.reshape(C_out, 1).astype(jnp.float32)

    if compute_dtype is not None:  # e.g. jnp.bfloat16 on v6e/v7x: halves DMA/VMEM traffic
        x_flat = x_flat.astype(compute_dtype)
        w2d = w2d.astype(compute_dtype)

    pair_offsets = tuple(
        ((p // 5) * Wp + p % 5, (q // 5) * Wp + q % 5)
        for p, q in zip(_POS_5X5, _NEG_5X5)
    )

    kernel = functools.partial(
        _rdc_kernel, pair_offsets=pair_offsets, c_pad=c_pad, tl=tl, tl_in=tl_in, nt=nt)

    # VMEM budget (explicit so tile sizes stay safe on v7x's 64 MiB physical VMEM):
    itemsize = x_flat.dtype.itemsize
    vmem_est = (2 * c_pad * tl_in * itemsize        # double-buffered halo'd input tile
                + 8 * c_pad * tl * itemsize         # im2col scratch
                + 2 * C_out * tl * 4)               # double-buffered output tile (f32)
    vmem_limit = int(min(96 << 20, max(32 << 20, 2 * vmem_est + (8 << 20))))

    out_flat = pl.pallas_call(
        kernel,
        out_shape=jax.ShapeDtypeStruct((N, C_out, nt * tl), x_nchw.dtype),
        grid_spec=pltpu.PrefetchScalarGridSpec(
            num_scalar_prefetch=0,
            grid=(N, nt),
            in_specs=[
                pl.BlockSpec(memory_space=pl.ANY),                     # x stays in HBM
                pl.BlockSpec((C_out, 8 * c_pad), lambda n, t: (0, 0)),
                pl.BlockSpec((C_out, 1), lambda n, t: (0, 0)),
            ],
            out_specs=pl.BlockSpec((None, C_out, tl), lambda n, t: (n, 0, t)),
            scratch_shapes=[
                pltpu.VMEM((2, c_pad, tl_in), x_flat.dtype),
                pltpu.SemaphoreType.DMA((2,)),
                pltpu.VMEM((8 * c_pad, tl), x_flat.dtype),
            ],
        ),
        compiler_params=pltpu.CompilerParams(
            # Batch axis feeds v7x's two TensorCores; the lane-tile axis must stay
            # "arbitrary" because the manual double-buffer chains DMAs across tiles.
            dimension_semantics=("parallel", "arbitrary"),
            vmem_limit_bytes=vmem_limit,
        ),
    )(x_flat, w2d, b2d)

    # Undo the flat layout: keep the H*Wp meaningful columns, drop the Wp -> W halo.
    y = out_flat[:, :, :H * Wp].reshape(N, C_out, H, Wp)[:, :, :, :W]
    return y


def _reference(x, weight, bias):
    buf = make_rdc_buffer(weight)
    y = lax.conv_general_dilated(
        x, buf, window_strides=(1, 1), padding=((2, 2), (2, 2)),
        dimension_numbers=("NCHW", "OIHW", "NCHW"))
    return y + bias.reshape(1, -1, 1, 1)


if __name__ == "__main__":
    key = jax.random.PRNGKey(0)

    # Small shapes consistent with the module: N=2, C_in=4, C_out=8, H=W=16, k=3.
    N, C_in, C_out, H, W = 2, 4, 8, 16, 16
    kx, kw, kb = jax.random.split(key, 3)
    x = jax.random.normal(kx, (N, C_in, H, W), jnp.float32)
    weight = jax.random.normal(kw, (C_out, C_in, 3, 3), jnp.float32)   # torch.randn analog
    bias = jax.random.normal(kb, (C_out,), jnp.float32)

    y = rdc_forward(x, weight, bias)
    y = jax.block_until_ready(y)
    assert y.shape == (N, C_out, H, W)
    assert jnp.allclose(y, _reference(x, weight, bias), atol=1e-4, rtol=1e-4)

    # Slightly larger spatial size to exercise the multi-tile (halo'd, double-buffered) path.
    H2 = W2 = 48
    x2 = jax.random.normal(kx, (N, C_in, H2, W2), jnp.float32)
    y2 = jax.block_until_ready(rdc_forward(x2, weight, bias))
    assert y2.shape == (N, C_out, H2, W2)
    assert jnp.allclose(y2, _reference(x2, weight, bias), atol=1e-4, rtol=1e-4)

    print("KERNEL_OK")
</pallas_src>

<mosaic_0001>
module attributes {stable_mosaic.version = 11 : i64} {
  func.func @_rdc_kernel(%arg0: i32, %arg1: i32, %arg2: memref<2x8x520xf32, #tpu.memory_space<any>>, %arg3: memref<8x64xf32, #tpu.memory_space<vmem>>, %arg4: memref<8x1xf32, #tpu.memory_space<vmem>>, %arg5: memref<1x8x384xf32, #tpu.memory_space<vmem>>, %arg6: memref<2x8x512xf32, #tpu.memory_space<vmem>>, %arg7: memref<2x!tpu.dma_semaphore, #tpu.memory_space<semaphore_mem>>, %arg8: memref<64x384xf32, #tpu.memory_space<vmem>>) attributes {dimension_semantics = [#tpu.dimension_semantics<parallel>, #tpu.dimension_semantics<arbitrary>], iteration_bounds = array<i64: 2, 1>, scalar_prefetch = 0 : i64, scratch_operands = 3 : i64, tpu.core_type = #tpu.core_type<tc>, window_params = [{}, {pipeline_mode = #tpu.pipeline_mode<synchronous>, transform_indices = @transform_1, window_bounds = array<i64: 8, 64>}, {pipeline_mode = #tpu.pipeline_mode<synchronous>, transform_indices = @transform_2, window_bounds = array<i64: 8, 1>}, {transform_indices = @transform_3, window_bounds = array<i64: 1, 8, 384>}]} {
    %c1_i32 = arith.constant 1 : i32
    %0 = arith.andi %arg1, %c1_i32 : i32
    %c0_i32 = arith.constant 0 : i32
    %1 = arith.cmpi eq, %arg1, %c0_i32 : i32
    %2 = arith.extui %1 : i1 to i32
    %c0_i32_0 = arith.constant 0 : i32
    %3 = arith.cmpi ne, %2, %c0_i32_0 : i32
    scf.if %3 {
      %c0_i32_76 = arith.constant 0 : i32
      %87 = tpu.assume_multiple %c0_i32_76, 128 : i32
      %c0_i32_77 = arith.constant 0 : i32
      %c0_i32_78 = arith.constant 0 : i32
      %c0_i32_79 = arith.constant 0 : i32
      %88 = tpu.memref_slice %arg2[%arg0, %c0_i32_79, %87] : memref<2x8x520xf32, #tpu.memory_space<any>> -> memref<1x8x512xf32, #tpu.memory_space<any>>
      %89 = tpu.memref_squeeze %88 : memref<1x8x512xf32, #tpu.memory_space<any>> -> memref<8x512xf32, #tpu.memory_space<any>>
      %c0_i32_80 = arith.constant 0 : i32
      %c0_i32_81 = arith.constant 0 : i32
      %90 = tpu.memref_slice %arg6[%c0_i32_77, %c0_i32_80, %c0_i32_81] : memref<2x8x512xf32, #tpu.memory_space<vmem>> -> memref<1x8x512xf32, #tpu.memory_space<vmem>>
      %91 = tpu.memref_squeeze %90 : memref<1x8x512xf32, #tpu.memory_space<vmem>> -> memref<8x512xf32, #tpu.memory_space<vmem>>
      %92 = tpu.memref_slice %arg7[%c0_i32_78] : memref<2x!tpu.dma_semaphore, #tpu.memory_space<semaphore_mem>> -> memref<1x!tpu.dma_semaphore, #tpu.memory_space<semaphore_mem>>
      %93 = tpu.memref_squeeze %92 : memref<1x!tpu.dma_semaphore, #tpu.memory_space<semaphore_mem>> -> memref<!tpu.dma_semaphore, #tpu.memory_space<semaphore_mem>>
      tpu.enqueue_dma source(%89 : memref<8x512xf32, #tpu.memory_space<any>>) target(%91 : memref<8x512xf32, #tpu.memory_space<vmem>>) target_semaphore(%93 : memref<!tpu.dma_semaphore, #tpu.memory_space<semaphore_mem>>)
    } else {
    }
    %c0_i32_1 = arith.constant 0 : i32
    %c0_i32_2 = arith.constant 0 : i32
    %c0_i32_3 = arith.constant 0 : i32
    %4 = tpu.memref_slice %arg2[%c0_i32_1, %c0_i32_2, %c0_i32_3] : memref<2x8x520xf32, #tpu.memory_space<any>> -> memref<1x8x512xf32, #tpu.memory_space<any>>
    %5 = tpu.memref_squeeze %4 : memref<1x8x512xf32, #tpu.memory_space<any>> -> memref<8x512xf32, #tpu.memory_space<any>>
    %c0_i32_4 = arith.constant 0 : i32
    %c0_i32_5 = arith.constant 0 : i32
    %6 = tpu.memref_slice %arg6[%0, %c0_i32_4, %c0_i32_5] : memref<2x8x512xf32, #tpu.memory_space<vmem>> -> memref<1x8x512xf32, #tpu.memory_space<vmem>>
    %7 = tpu.memref_squeeze %6 : memref<1x8x512xf32, #tpu.memory_space<vmem>> -> memref<8x512xf32, #tpu.memory_space<vmem>>
    %8 = tpu.memref_slice %arg7[%0] : memref<2x!tpu.dma_semaphore, #tpu.memory_space<semaphore_mem>> -> memref<1x!tpu.dma_semaphore, #tpu.memory_space<semaphore_mem>>
    %9 = tpu.memref_squeeze %8 : memref<1x!tpu.dma_semaphore, #tpu.memory_space<semaphore_mem>> -> memref<!tpu.dma_semaphore, #tpu.memory_space<semaphore_mem>>
    tpu.wait_dma2 semaphore(%9 : memref<!tpu.dma_semaphore, #tpu.memory_space<semaphore_mem>>) src(%5 : memref<8x512xf32, #tpu.memory_space<any>>) dst(%7 : memref<8x512xf32, #tpu.memory_space<vmem>>)
    %c1_i32_6 = arith.constant 1 : i32
    %10 = arith.addi %arg1, %c1_i32_6 : i32
    %c1_i32_7 = arith.constant 1 : i32
    %11 = arith.cmpi slt, %10, %c1_i32_7 : i32
    %12 = arith.extui %11 : i1 to i32
    %c0_i32_8 = arith.constant 0 : i32
    %13 = arith.cmpi ne, %12, %c0_i32_8 : i32
    scf.if %13 {
      %c1_i32_76 = arith.constant 1 : i32
      %87 = arith.addi %arg1, %c1_i32_76 : i32
      %c1_i32_77 = arith.constant 1 : i32
      %88 = arith.subi %c1_i32_77, %0 : i32
      %c384_i32 = arith.constant 384 : i32
      %89 = arith.muli %87, %c384_i32 : i32
      %90 = tpu.assume_multiple %89, 128 : i32
      %c0_i32_78 = arith.constant 0 : i32
      %91 = tpu.memref_slice %arg2[%arg0, %c0_i32_78, %90] : memref<2x8x520xf32, #tpu.memory_space<any>> -> memref<1x8x512xf32, #tpu.memory_space<any>>
      %92 = tpu.memref_squeeze %91 : memref<1x8x512xf32, #tpu.memory_space<any>> -> memref<8x512xf32, #tpu.memory_space<any>>
      %c0_i32_79 = arith.constant 0 : i32
      %c0_i32_80 = arith.constant 0 : i32
      %93 = tpu.memref_slice %arg6[%88, %c0_i32_79, %c0_i32_80] : memref<2x8x512xf32, #tpu.memory_space<vmem>> -> memref<1x8x512xf32, #tpu.memory_space<vmem>>
      %94 = tpu.memref_squeeze %93 : memref<1x8x512xf32, #tpu.memory_space<vmem>> -> memref<8x512xf32, #tpu.memory_space<vmem>>
      %95 = tpu.memref_slice %arg7[%88] : memref<2x!tpu.dma_semaphore, #tpu.memory_space<semaphore_mem>> -> memref<1x!tpu.dma_semaphore, #tpu.memory_space<semaphore_mem>>
      %96 = tpu.memref_squeeze %95 : memref<1x!tpu.dma_semaphore, #tpu.memory_space<semaphore_mem>> -> memref<!tpu.dma_semaphore, #tpu.memory_space<semaphore_mem>>
      tpu.enqueue_dma source(%92 : memref<8x512xf32, #tpu.memory_space<any>>) target(%94 : memref<8x512xf32, #tpu.memory_space<vmem>>) target_semaphore(%96 : memref<!tpu.dma_semaphore, #tpu.memory_space<semaphore_mem>>)
    } else {
    }
    %c0_i32_9 = arith.constant 0 : i32
    %c0_i32_10 = arith.constant 0 : i32
    %14 = tpu.memref_slice %arg6[%0, %c0_i32_9, %c0_i32_10] : memref<2x8x512xf32, #tpu.memory_space<vmem>> -> memref<1x8x512xf32, #tpu.memory_space<vmem>>
    %15 = tpu.memref_squeeze %14 : memref<1x8x512xf32, #tpu.memory_space<vmem>> -> memref<8x512xf32, #tpu.memory_space<vmem>>
    %c0 = arith.constant 0 : index
    %c0_11 = arith.constant 0 : index
    %16 = vector.load %15[%c0, %c0_11] : memref<8x512xf32, #tpu.memory_space<vmem>>, vector<8x384xf32>
    %c0_i32_12 = arith.constant 0 : i32
    %c0_i32_13 = arith.constant 0 : i32
    %17 = tpu.memref_slice %arg6[%0, %c0_i32_12, %c0_i32_13] : memref<2x8x512xf32, #tpu.memory_space<vmem>> -> memref<1x8x512xf32, #tpu.memory_space<vmem>>
    %18 = tpu.memref_squeeze %17 : memref<1x8x512xf32, #tpu.memory_space<vmem>> -> memref<8x512xf32, #tpu.memory_space<vmem>>
    %c0_14 = arith.constant 0 : index
    %c21 = arith.constant 21 : index
    %19 = vector.load %18[%c0_14, %c21] : memref<8x512xf32, #tpu.memory_space<vmem>>, vector<8x384xf32>
    %20 = arith.subf %16, %19 : vector<8x384xf32>
    %c0_15 = arith.constant 0 : index
    %c0_16 = arith.constant 0 : index
    %21 = vector.load %arg8[%c0_15, %c0_16] : memref<64x384xf32, #tpu.memory_space<vmem>>, vector<8x384xf32>
    tpu.vector_store %arg8[%c0_15, %c0_16], %20 {strides = array<i32>} : memref<64x384xf32, #tpu.memory_space<vmem>>, vector<8x384xf32>,
    %c0_i32_17 = arith.constant 0 : i32
    %c0_i32_18 = arith.constant 0 : i32
    %22 = tpu.memref_slice %arg6[%0, %c0_i32_17, %c0_i32_18] : memref<2x8x512xf32, #tpu.memory_space<vmem>> -> memref<1x8x512xf32, #tpu.memory_space<vmem>>
    %23 = tpu.memref_squeeze %22 : memref<1x8x512xf32, #tpu.memory_space<vmem>> -> memref<8x512xf32, #tpu.memory_space<vmem>>
    %c0_19 = arith.constant 0 : index
    %c2 = arith.constant 2 : index
    %24 = vector.load %23[%c0_19, %c2] : memref<8x512xf32, #tpu.memory_space<vmem>>, vector<8x384xf32>
    %c0_i32_20 = arith.constant 0 : i32
    %c0_i32_21 = arith.constant 0 : i32
    %25 = tpu.memref_slice %arg6[%0, %c0_i32_20, %c0_i32_21] : memref<2x8x512xf32, #tpu.memory_space<vmem>> -> memref<1x8x512xf32, #tpu.memory_space<vmem>>
    %26 = tpu.memref_squeeze %25 : memref<1x8x512xf32, #tpu.memory_space<vmem>> -> memref<8x512xf32, #tpu.memory_space<vmem>>
    %c0_22 = arith.constant 0 : index
    %c22 = arith.constant 22 : index
    %27 = vector.load %26[%c0_22, %c22] : memref<8x512xf32, #tpu.memory_space<vmem>>, vector<8x384xf32>
    %28 = arith.subf %24, %27 : vector<8x384xf32>
    %c8 = arith.constant 8 : index
    %c0_23 = arith.constant 0 : index
    %29 = vector.load %arg8[%c8, %c0_23] : memref<64x384xf32, #tpu.memory_space<vmem>>, vector<8x384xf32>
    tpu.vector_store %arg8[%c8, %c0_23], %28 {strides = array<i32>} : memref<64x384xf32, #tpu.memory_space<vmem>>, vector<8x384xf32>,
    %c0_i32_24 = arith.constant 0 : i32
    %c0_i32_25 = arith.constant 0 : i32
    %30 = tpu.memref_slice %arg6[%0, %c0_i32_24, %c0_i32_25] : memref<2x8x512xf32, #tpu.memory_space<vmem>> -> memref<1x8x512xf32, #tpu.memory_space<vmem>>
    %31 = tpu.memref_squeeze %30 : memref<1x8x512xf32, #tpu.memory_space<vmem>> -> memref<8x512xf32, #tpu.memory_space<vmem>>
    %c0_26 = arith.constant 0 : index
    %c4 = arith.constant 4 : index
    %32 = vector.load %31[%c0_26, %c4] : memref<8x512xf32, #tpu.memory_space<vmem>>, vector<8x384xf32>
    %c0_i32_27 = arith.constant 0 : i32
    %c0_i32_28 = arith.constant 0 : i32
    %33 = tpu.memref_slice %arg6[%0, %c0_i32_27, %c0_i32_28] : memref<2x8x512xf32, #tpu.memory_space<vmem>> -> memref<1x8x512xf32, #tpu.memory_space<vmem>>
    %34 = tpu.memref_squeeze %33 : memref<1x8x512xf32, #tpu.memory_space<vmem>> -> memref<8x512xf32, #tpu.memory_space<vmem>>
    %c0_29 = arith.constant 0 : index
    %c23 = arith.constant 23 : index
    %35 = vector.load %34[%c0_29, %c23] : memref<8x512xf32, #tpu.memory_space<vmem>>, vector<8x384xf32>
    %36 = arith.subf %32, %35 : vector<8x384xf32>
    %c16 = arith.constant 16 : index
    %c0_30 = arith.constant 0 : index
    %37 = vector.load %arg8[%c16, %c0_30] : memref<64x384xf32, #tpu.memory_space<vmem>>, vector<8x384xf32>
    tpu.vector_store %arg8[%c16, %c0_30], %36 {strides = array<i32>} : memref<64x384xf32, #tpu.memory_space<vmem>>, vector<8x384xf32>,
    %c0_i32_31 = arith.constant 0 : i32
    %c0_i32_32 = arith.constant 0 : i32
    %38 = tpu.memref_slice %arg6[%0, %c0_i32_31, %c0_i32_32] : memref<2x8x512xf32, #tpu.memory_space<vmem>> -> memref<1x8x512xf32, #tpu.memory_space<vmem>>
    %39 = tpu.memref_squeeze %38 : memref<1x8x512xf32, #tpu.memory_space<vmem>> -> memref<8x512xf32, #tpu.memory_space<vmem>>
    %c0_33 = arith.constant 0 : index
    %c40 = arith.constant 40 : index
    %40 = vector.load %39[%c0_33, %c40] : memref<8x512xf32, #tpu.memory_space<vmem>>, vector<8x384xf32>
    %c0_i32_34 = arith.constant 0 : i32
    %c0_i32_35 = arith.constant 0 : i32
    %41 = tpu.memref_slice %arg6[%0, %c0_i32_34, %c0_i32_35] : memref<2x8x512xf32, #tpu.memory_space<vmem>> -> memref<1x8x512xf32, #tpu.memory_space<vmem>>
    %42 = tpu.memref_squeeze %41 : memref<1x8x512xf32, #tpu.memory_space<vmem>> -> memref<8x512xf32, #tpu.memory_space<vmem>>
    %c0_36 = arith.constant 0 : index
    %c41 = arith.constant 41 : index
    %43 = vector.load %42[%c0_36, %c41] : memref<8x512xf32, #tpu.memory_space<vmem>>, vector<8x384xf32>
    %44 = arith.subf %40, %43 : vector<8x384xf32>
    %c24 = arith.constant 24 : index
    %c0_37 = arith.constant 0 : index
    %45 = vector.load %arg8[%c24, %c0_37] : memref<64x384xf32, #tpu.memory_space<vmem>>, vector<8x384xf32>
    tpu.vector_store %arg8[%c24, %c0_37], %44 {strides = array<i32>} : memref<64x384xf32, #tpu.memory_space<vmem>>, vector<8x384xf32>,
    %c0_i32_38 = arith.constant 0 : i32
    %c0_i32_39 = arith.constant 0 : i32
    %46 = tpu.memref_slice %arg6[%0, %c0_i32_38, %c0_i32_39] : memref<2x8x512xf32, #tpu.memory_space<vmem>> -> memref<1x8x512xf32, #tpu.memory_space<vmem>>
    %47 = tpu.memref_squeeze %46 : memref<1x8x512xf32, #tpu.memory_space<vmem>> -> memref<8x512xf32, #tpu.memory_space<vmem>>
    %c0_40 = arith.constant 0 : index
    %c44 = arith.constant 44 : index
    %48 = vector.load %47[%c0_40, %c44] : memref<8x512xf32, #tpu.memory_space<vmem>>, vector<8x384xf32>
    %c0_i32_41 = arith.constant 0 : i32
    %c0_i32_42 = arith.constant 0 : i32
    %49 = tpu.memref_slice %arg6[%0, %c0_i32_41, %c0_i32_42] : memref<2x8x512xf32, #tpu.memory_space<vmem>> -> memref<1x8x512xf32, #tpu.memory_space<vmem>>
    %50 = tpu.memref_squeeze %49 : memref<1x8x512xf32, #tpu.memory_space<vmem>> -> memref<8x512xf32, #tpu.memory_space<vmem>>
    %c0_43 = arith.constant 0 : index
    %c43 = arith.constant 43 : index
    %51 = vector.load %50[%c0_43, %c43] : memref<8x512xf32, #tpu.memory_space<vmem>>, vector<8x384xf32>
    %52 = arith.subf %48, %51 : vector<8x384xf32>
    %c32 = arith.constant 32 : index
    %c0_44 = arith.constant 0 : index
    %53 = vector.load %arg8[%c32, %c0_44] : memref<64x384xf32, #tpu.memory_space<vmem>>, vector<8x384xf32>
    tpu.vector_store %arg8[%c32, %c0_44], %52 {strides = array<i32>} : memref<64x384xf32, #tpu.memory_space<vmem>>, vector<8x384xf32>,
    %c0_i32_45 = arith.constant 0 : i32
    %c0_i32_46 = arith.constant 0 : i32
    %54 = tpu.memref_slice %arg6[%0, %c0_i32_45, %c0_i32_46] : memref<2x8x512xf32, #tpu.memory_space<vmem>> -> memref<1x8x512xf32, #tpu.memory_space<vmem>>
    %55 = tpu.memref_squeeze %54 : memref<1x8x512xf32, #tpu.memory_space<vmem>> -> memref<8x512xf32, #tpu.memory_space<vmem>>
    %c0_47 = arith.constant 0 : index
    %c80 = arith.constant 80 : index
    %56 = vector.load %55[%c0_47, %c80] : memref<8x512xf32, #tpu.memory_space<vmem>>, vector<8x384xf32>
    %c0_i32_48 = arith.constant 0 : i32
    %c0_i32_49 = arith.constant 0 : i32
    %57 = tpu.memref_slice %arg6[%0, %c0_i32_48, %c0_i32_49] : memref<2x8x512xf32, #tpu.memory_space<vmem>> -> memref<1x8x512xf32, #tpu.memory_space<vmem>>
    %58 = tpu.memref_squeeze %57 : memref<1x8x512xf32, #tpu.memory_space<vmem>> -> memref<8x512xf32, #tpu.memory_space<vmem>>
    %c0_50 = arith.constant 0 : index
    %c61 = arith.constant 61 : index
    %59 = vector.load %58[%c0_50, %c61] : memref<8x512xf32, #tpu.memory_space<vmem>>, vector<8x384xf32>
    %60 = arith.subf %56, %59 : vector<8x384xf32>
    %c40_51 = arith.constant 40 : index
    %c0_52 = arith.constant 0 : index
    %61 = vector.load %arg8[%c40_51, %c0_52] : memref<64x384xf32, #tpu.memory_space<vmem>>, vector<8x384xf32>
    tpu.vector_store %arg8[%c40_51, %c0_52], %60 {strides = array<i32>} : memref<64x384xf32, #tpu.memory_space<vmem>>, vector<8x384xf32>,
    %c0_i32_53 = arith.constant 0 : i32
    %c0_i32_54 = arith.constant 0 : i32
    %62 = tpu.memref_slice %arg6[%0, %c0_i32_53, %c0_i32_54] : memref<2x8x512xf32, #tpu.memory_space<vmem>> -> memref<1x8x512xf32, #tpu.memory_space<vmem>>
    %63 = tpu.memref_squeeze %62 : memref<1x8x512xf32, #tpu.memory_space<vmem>> -> memref<8x512xf32, #tpu.memory_space<vmem>>
    %c0_55 = arith.constant 0 : index
    %c82 = arith.constant 82 : index
    %64 = vector.load %63[%c0_55, %c82] : memref<8x512xf32, #tpu.memory_space<vmem>>, vector<8x384xf32>
    %c0_i32_56 = arith.constant 0 : i32
    %c0_i32_57 = arith.constant 0 : i32
    %65 = tpu.memref_slice %arg6[%0, %c0_i32_56, %c0_i32_57] : memref<2x8x512xf32, #tpu.memory_space<vmem>> -> memref<1x8x512xf32, #tpu.memory_space<vmem>>
    %66 = tpu.memref_squeeze %65 : memref<1x8x512xf32, #tpu.memory_space<vmem>> -> memref<8x512xf32, #tpu.memory_space<vmem>>
    %c0_58 = arith.constant 0 : index
    %c62 = arith.constant 62 : index
    %67 = vector.load %66[%c0_58, %c62] : memref<8x512xf32, #tpu.memory_space<vmem>>, vector<8x384xf32>
    %68 = arith.subf %64, %67 : vector<8x384xf32>
    %c48 = arith.constant 48 : index
    %c0_59 = arith.constant 0 : index
    %69 = vector.load %arg8[%c48, %c0_59] : memref<64x384xf32, #tpu.memory_space<vmem>>, vector<8x384xf32>
    tpu.vector_store %arg8[%c48, %c0_59], %68 {strides = array<i32>} : memref<64x384xf32, #tpu.memory_space<vmem>>, vector<8x384xf32>,
    %c0_i32_60 = arith.constant 0 : i32
    %c0_i32_61 = arith.constant 0 : i32
    %70 = tpu.memref_slice %arg6[%0, %c0_i32_60, %c0_i32_61] : memref<2x8x512xf32, #tpu.memory_space<vmem>> -> memref<1x8x512xf32, #tpu.memory_space<vmem>>
    %71 = tpu.memref_squeeze %70 : memref<1x8x512xf32, #tpu.memory_space<vmem>> -> memref<8x512xf32, #tpu.memory_space<vmem>>
    %c0_62 = arith.constant 0 : index
    %c84 = arith.constant 84 : index
    %72 = vector.load %71[%c0_62, %c84] : memref<8x512xf32, #tpu.memory_space<vmem>>, vector<8x384xf32>
    %c0_i32_63 = arith.constant 0 : i32
    %c0_i32_64 = arith.constant 0 : i32
    %73 = tpu.memref_slice %arg6[%0, %c0_i32_63, %c0_i32_64] : memref<2x8x512xf32, #tpu.memory_space<vmem>> -> memref<1x8x512xf32, #tpu.memory_space<vmem>>
    %74 = tpu.memref_squeeze %73 : memref<1x8x512xf32, #tpu.memory_space<vmem>> -> memref<8x512xf32, #tpu.memory_space<vmem>>
    %c0_65 = arith.constant 0 : index
    %c63 = arith.constant 63 : index
    %75 = vector.load %74[%c0_65, %c63] : memref<8x512xf32, #tpu.memory_space<vmem>>, vector<8x384xf32>
    %76 = arith.subf %72, %75 : vector<8x384xf32>
    %c56 = arith.constant 56 : index
    %c0_66 = arith.constant 0 : index
    %77 = vector.load %arg8[%c56, %c0_66] : memref<64x384xf32, #tpu.memory_space<vmem>>, vector<8x384xf32>
    tpu.vector_store %arg8[%c56, %c0_66], %76 {strides = array<i32>} : memref<64x384xf32, #tpu.memory_space<vmem>>, vector<8x384xf32>,
    %c0_67 = arith.constant 0 : index
    %c0_68 = arith.constant 0 : index
    %78 = vector.load %arg3[%c0_67, %c0_68] : memref<8x64xf32, #tpu.memory_space<vmem>>, vector<8x64xf32>
    %c0_69 = arith.constant 0 : index
    %c0_70 = arith.constant 0 : index
    %79 = vector.load %arg8[%c0_69, %c0_70] : memref<64x384xf32, #tpu.memory_space<vmem>>, vector<64x384xf32>
    %cst = arith.constant dense<0.000000e+00> : vector<8x384xf32>
    %80 = tpu.matmul %78, %79, %cst {dimension_numbers = #tpu.dot_dimension_numbers<[1], [0], [0], [1], [0, 0, 1, 1], [], []>} : vector<8x64xf32>, vector<64x384xf32>, vector<8x384xf32> -> vector<8x384xf32>
    %c0_71 = arith.constant 0 : index
    %c0_72 = arith.constant 0 : index
    %81 = vector.load %arg4[%c0_71, %c0_72] : memref<8x1xf32, #tpu.memory_space<vmem>>, vector<8x1xf32>
    %82 = vector.broadcast %81 : vector<8x1xf32> to vector<8x384xf32>
    %83 = arith.addf %80, %82 : vector<8x384xf32>
    %c0_73 = arith.constant 0 : index
    %c0_74 = arith.constant 0 : index
    %c0_75 = arith.constant 0 : index
    %84 = vector.load %arg5[%c0_73, %c0_74, %c0_75] : memref<1x8x384xf32, #tpu.memory_space<vmem>>, vector<1x8x384xf32>
    %85 = vector.shape_cast %84 : vector<1x8x384xf32> to vector<8x384xf32>
    %86 = vector.shape_cast %83 : vector<8x384xf32> to vector<1x8x384xf32>
    tpu.vector_store %arg5[%c0_73, %c0_74, %c0_75], %86 {strides = array<i32>} : memref<1x8x384xf32, #tpu.memory_space<vmem>>, vector<1x8x384xf32>,
    return
  }
  func.func @transform_1(%arg0: i32, %arg1: i32) -> (i32, i32) {
    %c0_i32 = arith.constant 0 : i32
    %c0_i32_0 = arith.constant 0 : i32
    %c0_i32_1 = arith.constant 0 : i32
    return %c0_i32, %c0_i32_0 : i32, i32
  }
  func.func @transform_2(%arg0: i32, %arg1: i32) -> (i32, i32) {
    %c0_i32 = arith.constant 0 : i32
    %c0_i32_0 = arith.constant 0 : i32
    %c0_i32_1 = arith.constant 0 : i32
    return %c0_i32, %c0_i32_0 : i32, i32
  }
  func.func @transform_3(%arg0: i32, %arg1: i32) -> (i32, i32, i32) {
    %c0_i32 = arith.constant 0 : i32
    %c0_i32_0 = arith.constant 0 : i32
    return %arg0, %c0_i32, %arg1 : i32, i32, i32
  }
}

</mosaic_0001>

<bundles_post_ra>
// kernel: tpu_custom_call.1
= control target key start
LH: loop header
LB: loop body
LE: loop exit
PB: predicated region body
PF: predicated region fallthrough
CT: control target
= control target key end

     0   :  { %8 = vsyncpa [#allocation6], 0  ;;  %s1461_s0 = inlined_call_operand.hbm [shape: f32[2,8,520], index: 0, kind: input, shape index: {}]   ;;  %s1462_s1 = inlined_call_operand.vmem [shape: f32[8,64], index: 1, kind: input, shape index: {}]   ;;  %s1463_s2 = inlined_call_operand.vmem [shape: f32[8,1], index: 2, kind: input, shape index: {}]   ;;  %s1464_s3 = inlined_call_operand.hbm [shape: f32[2,8,384], index: 3, kind: output, shape index: {}]  }
   0x1   :  { %10 = vsyncpa [#allocation6 + $0x1], 0  ;;  %s1223_s12 = smov 0   ;;  %s1225_s13 = smov 0  }
   0x2   :  { %s1227_s14 = smov 0   ;;  %s1229_s15 = smov 0  }
   0x3   :  { %s1231_s16 = smov 0   ;;  %s1233_s17 = smov 0  }
   0x4 LB: > { %s856_s18 = sadd.s32 4294967295, %s1180_s17   ;;  %s857_s19 = sadd.s32 4294967294, %s1180_s17   ;;  %s1180_s17 = sphi %s1233_s17, %s16_s17   ;;  %s1176_s16 = sphi %s1231_s16, %s1471_s16   ;;  %s1172_s15 = sphi %s1229_s15, %s1470_s15   ;;  %s1168_s14 = sphi %s1227_s14, %s1469_s14   ;;  %s1164_s13 = sphi %s1225_s13, %s1468_s13   ;;  %s1160_s12 = sphi %s1223_s12, %s1467_s12  }
   0x5   : > { %s28_s20 = sadd.s32 1, %s1176_s16  ;;  %s79_s21 = sadd.s32 1, %s1168_s14 }
   0x6   : > { %p30_p0 = scmp.ge.s32.totalorder %s28_s20, 2  ;;  %p89_p1 = scmp.ne.s32.totalorder %s1168_s14, %s1164_s13 }
   0x7   : > { %p90_p2 = scmp.eq.s32.totalorder %s856_s18, 1  ;;  %p95_p3 = scmp.ne.s32.totalorder %s1164_s13, %s1160_s12 }
   0x8   : > { %s1473_s20 = smov (%p30_p0, %s28_s20), 0  ;;  %p96_p5 = scmp.eq.s32.totalorder %s857_s19, 1 }
   0x9   : > { %p1263_p4 = por %p90_p2, %p89_p1  ;;  %s74_s23 = ssub.s32 %s1176_s16, %s1473_s20 }
   0xa   : > { %p859_p6 = scmp.ge.s32.totalorder %s1180_s17, 1  ;;  %p77_p7 = scmp.eq.s32.totalorder %s74_s23, 0 }
   0xb   : > { %p1270_p8 = por %p96_p5, %p95_p3  ;;  %p120_p9 = scmp.lt.s32.totalorder %s1180_s17, 3 }
   0xc   : > { %s1276_s25 = scalar_select %p77_p7, %s1168_s14, %s79_s21  }
   0xd   : > { %p121_p10 = pnand %p859_p6, %p120_p9 }
   0xe   : > { %s134_s26 = sand.u32 (!%p121_p10), 1, %s1164_s13   ;;  %s869_s27 = smul.u32 (!%p121_p10), 640, %s1172_s15 }
   0xf   : > { %124 = sbr.rel (%p121_p10) target bundleno = 565 (0x235), region = 28  ;;  %s1182_s5 = smov (!%p121_p10), [#allocation2]  }
  0x10   : > { %s928_s28 = smul.u32 (!%p121_p10), 24, %s134_s26  ;;  %s146_s4 = scalar_lea.hbm (!%p121_p10), %s1461_s0, %s869_s27 }
  0x11   : > { %s154_s6 = sshll.u32 (!%p121_p10), %s1182_s5, 4  ;;  %s1076_s7 = scalar_lea.hbm (!%p121_p10), %s146_s4, 512  ;;  %s155_s6 = int_to_ptr.vmem [resolvable:$true] %s154_s6 }
  0x12   : > { %p1077_p11 = scmp.ne.s32.totalorder (!%p121_p10), %s146_s4, %s1076_s7  ;;  %s1078_s10 = scalar_lea.hbm (!%p121_p10), %s1461_s0, 1280 }
  0x13   : > { %p1079_p12 = scmp.lt.u32.totalorder (!%p121_p10), %s146_s4, %s1461_s0  ;;  %p1080_p13 = scmp.lt.u32.totalorder (!%p121_p10), %s1078_s10, %s1076_s7 }
  0x14   : > { %p1082_p1 = scmp.lt.u32.totalorder (!%p121_p10), %s1076_s7, %s146_s4 }
  0x15   : > { %p1081_p0 = por (!%p121_p10), %p1080_p13, %p1079_p12 }
  0x17   : > { %p1083_p2 = por %p1082_p1, %p1081_p0 }
  0x19   : > { %p1084_p3 = pnand %p1083_p2, %p1077_p11 }
  0x1b   : > { %1087 = shalt.err (!%p1084_p3)  }
  0x1c   : > { %s1088_s19 = scalar_lea.vmem %s155_s6, 512  ;;  %s1092_s21 = scalar_lea.vmem %s155_s6, 1024 }
  0x1d   : > { %p1089_p5 = scmp.ne.s32.totalorder %s155_s6, %s1088_s19  ;;  %p1093_p6 = scmp.lt.s32.totalorder %s155_s6, %s155_s6 }
  0x1e   : > { %p1094_p7 = scmp.lt.s32.totalorder %s1092_s21, %s1088_s19 }
  0x20   : > { %p1095_p9 = por %p1094_p7, %p1093_p6 }
  0x22   : > { %p1096_p10 = pnand %p1095_p9, %p1089_p5 }
  0x24   : > { %1099 = shalt.err (!%p1096_p10)  }
  0x25   : > { %157 = dma.hbm_to_vmem [thread:$0]  %s146_s4, 512, %s155_s6, [#allocation3] }
  0x26   : > { %s1291_s23 = scalar_lea.vmem [#allocation5], %s928_s28 }
  0x27   : > { %1152 = dma.done.wait [#allocation3], 512 }
  0x28   : > { %1153 = vsyncadd [#allocation3], 4294966784  ;;  %v1293_v0 = vld [vmem:[#allocation2 + $0x18] sm:$0xff]  ;;  %v1295_v1 = vld [vmem:[#allocation2 + $0x8] sm:$0xff]  ;;  %s1183_s27 = smov 108   ;;  %s1184_s28 = smov 109  }
  0x29   : > { %240 = vrot.lane.b32.xlu1 %v1293_v0, %s1183_s27  ;;  %236 = vrot.lane.b32.xlu0 %v1295_v1, %s1183_s27  ;;  %v1299_v2 = vld [vmem:[#allocation2 + $0x10] sm:$0xff]  ;;  %v1301_v3 = vld [vmem:[#allocation2] sm:$0xff]  ;;  %s1185_s29 = smov 127   ;;  %s1186_s30 = smov 1   ;;  %v1191_v4 = vmov 0.0|0.0   ;;  %vm242_vm0 = vcmask 883712  }
  0x2a   : > { %s1187_s4 = smov 19   ;;  %s1188_s5 = smov 20   ;;  %916 = vmatprep.subr.bf16.mxu1 %v1191_v4  ;;  %vm292_vm1 = vcmask 891904   ;;  %vm342_vm2 = vcmask 1039360   ;;  %vm392_vm3 = vcmask 7168   ;;  %vm442_vm4 = vcmask 154624  }
  0x2b   : > { %s1189_s6 = smov 21   ;;  %s1190_s7 = smov 107   ;;  %vm492_vm5 = vcmask 162816   ;;  %vm542_vm6 = vcmask 171008   ;;  %vm1199_vm7 = vmmov 0   ;;  %vm213_vm8 = vcmask 875520  }
  0x2c   : > { %s1192_s8 = smov 126   ;;  %s1193_s9 = smov 124   ;;  %vm266_vm9 = vcmask 1031168   ;;  %vm316_vm10 = vcmask 1014784   ;;  %vm366_vm11 = vcmask 719872   ;;  %vm416_vm12 = vcmask 687104  }
  0x2d   : > { %238 = vrot.lane.b32.xlu0 %v1299_v2, %s1183_s27  ;;  %234 = vrot.lane.b32.xlu1 %v1301_v3, %s1183_s27  ;;  %s1194_s10 = smov 88   ;;  %s1195_s11 = smov 84   ;;  %vm466_vm13 = vcmask 392192   ;;  %vm516_vm14 = vcmask 375808   ;;  %vm566_vm15 = vcmask 359424  }
  0x2e   : > { %s1196_s18 = smov 48   ;;  %s1197_s19 = smov 46  }
  0x2f   : > { %s1200_s21 = smov 44  }
  0x31   : > { %286 = vrot.lane.b32.xlu0 %v1295_v1, %s1184_s28  ;;  %288 = vrot.lane.b32.xlu1 %v1299_v2, %s1184_s28 }
  0x35   : > { %290 = vrot.lane.b32.xlu0 %v1293_v0, %s1184_s28  ;;  %336 = vrot.lane.b32.xlu1 %v1295_v1, %s1185_s29 }
  0x39   : > { %338 = vrot.lane.b32.xlu0 %v1299_v2, %s1185_s29  ;;  %340 = vrot.lane.b32.xlu1 %v1293_v0, %s1185_s29 }
  0x3d   : > { %284 = vrot.lane.b32.xlu0 %v1301_v3, %s1184_s28  ;;  %334 = vrot.lane.b32.xlu1 %v1301_v3, %s1185_s29 }
  0x41   : > { %384 = vrot.lane.b32.xlu0 %v1301_v3, %s1186_s30  ;;  %386 = vrot.lane.b32.xlu1 %v1295_v1, %s1186_s30 }
  0x45   : > { %388 = vrot.lane.b32.xlu0 %v1299_v2, %s1186_s30  ;;  %434 = vrot.lane.b32.xlu1 %v1301_v3, %s1187_s4 }
  0x49   : > { %436 = vrot.lane.b32.xlu0 %v1295_v1, %s1187_s4  ;;  %438 = vrot.lane.b32.xlu1 %v1299_v2, %s1187_s4 }
  0x4d   : > { %390 = vrot.lane.b32.xlu0 %v1293_v0, %s1186_s30  ;;  %440 = vrot.lane.b32.xlu1 %v1293_v0, %s1187_s4  ;;  %s929_s4 = smul.u32 384, %s1172_s15  ;;  %s756_s15 = scalar_lea.sflag [#allocation6], %s134_s26 }
  0x51   : > { %484 = vrot.lane.b32.xlu0 %v1301_v3, %s1188_s5  ;;  %486 = vrot.lane.b32.xlu1 %v1295_v1, %s1188_s5 }
  0x55   : > { %488 = vrot.lane.b32.xlu0 %v1299_v2, %s1188_s5  ;;  %534 = vrot.lane.b32.xlu1 %v1301_v3, %s1189_s6 }
  0x59   : > { %536 = vrot.lane.b32.xlu0 %v1295_v1, %s1189_s6  ;;  %538 = vrot.lane.b32.xlu1 %v1299_v2, %s1189_s6 }
  0x5d   : > { %490 = vrot.lane.b32.xlu0 %v1293_v0, %s1188_s5  ;;  %540 = vrot.lane.b32.xlu1 %v1293_v0, %s1189_s6  ;;  %s772_s5 = sshll.u32 %s1291_s23, 4  ;;  %s1411_s5 = int_to_ptr.vmem [resolvable:$true] %s772_s5 }
  0x61   : > { %209 = vrot.lane.b32.xlu1 %v1299_v2, %s1190_s7  ;;  %207 = vrot.lane.b32.xlu0 %v1295_v1, %s1190_s7 }
  0x65   : > { %211 = vrot.lane.b32.xlu1 %v1293_v0, %s1190_s7  ;;  %205 = vrot.lane.b32.xlu0 %v1301_v3, %s1190_s7 }
  0x9b   : > { %v241_v5 = vpop.permute.xlu1 %240  ;;  %v237_v6 = vpop.permute.xlu0 %236 }
  0x9c   : > { %v253_v12 = vsub.f32 %v1293_v0, %v241_v5 }
  0x9f   : > { %v239_v7 = vpop.permute.xlu0 %238  ;;  %v235_v8 = vpop.permute.xlu1 %234 }
  0xa0   : > { %v244_v9 = vsel %vm242_vm0, %v237_v6, %v239_v7  ;;  %v245_v10 = vsel %vm242_vm0, %v239_v7, %v241_v5  ;;  %v243_v11 = vsel %vm242_vm0, %v235_v8, %v237_v6  ;;  %vm607_vm0 = vcmask 523264  }
  0xa1   : > { %v251_v13 = vsub.f32 %v1295_v1, %v244_v9  ;;  %v252_v14 = vsub.f32 %v1299_v2, %v245_v10  ;;  %v250_v15 = vsub.f32 %v1301_v3, %v243_v11 }
  0xa3   : > { %v287_v16 = vpop.permute.xlu0 %286  ;;  %v289_v17 = vpop.permute.xlu1 %288  ;;  %v1010_v18 = vpack.i.bf16 %v253_v12, %v250_v15  ;;  %v1005_v19 = vpack.i.bf16 %v252_v14, %v251_v13 }
  0xa4   : > { %v294_v20 = vsel %vm292_vm1, %v287_v16, %v289_v17 }
  0xa5   : > { %1011 = vrot.lane.b32.xlu1 %v1010_v18, %s1192_s8  ;;  %1006 = vrot.lane.b32.xlu0 %v1005_v19, %s1192_s8  ;;  %v301_v24 = vsub.f32 %v1295_v1, %v294_v20  ;;  %s1409_s8 = scalar_lea.hbm %s1464_s3, %s929_s4 }
  0xa7   : > { %v291_v21 = vpop.permute.xlu0 %290  ;;  %v337_v22 = vpop.permute.xlu1 %336 }
  0xa8   : > { %v295_v23 = vsel %vm292_vm1, %v289_v17, %v291_v21  ;;  %v303_v38 = vsub.f32 %v1293_v0, %v291_v21 }
  0xa9   : > { %v302_v25 = vsub.f32 %v1299_v2, %v295_v23 }
  0xab   : > { %v339_v26 = vpop.permute.xlu0 %338  ;;  %v341_v27 = vpop.permute.xlu1 %340  ;;  %v1015_v28 = vpack.i.bf16 %v302_v25, %v301_v24 }
  0xac   : > { %v344_v29 = vsel %vm342_vm2, %v337_v22, %v339_v26  ;;  %v345_v30 = vsel %vm342_vm2, %v339_v26, %v341_v27  ;;  %v353_v39 = vsub.f32 %v1293_v0, %v341_v27  ;;  %v1198_v26 = vmov 0.0  }
  0xad   : > { %v351_v31 = vsub.f32 %v1295_v1, %v344_v29  ;;  %v352_v32 = vsub.f32 %v1299_v2, %v345_v30  ;;  %1016 = vrot.lane.b32.xlu0 %v1015_v28, %s1193_s9  ;;  %675 = vmatprep.mubr.f32.mxu0 %v1198_v26 }
  0xae   : > { %897 = vmatprep.mubr.msk.f32.mxu1 %vm1199_vm7, %v1198_v26 }
  0xaf   : > { %v285_v33 = vpop.permute.xlu0 %284  ;;  %v335_v34 = vpop.permute.xlu1 %334  ;;  %v1020_v35 = vpack.i.bf16 %v352_v32, %v351_v31 }
  0xb0   : > { %v293_v36 = vsel %vm292_vm1, %v285_v33, %v287_v16  ;;  %v343_v37 = vsel %vm342_vm2, %v335_v34, %v337_v22 }
  0xb1   : > { %v300_v40 = vsub.f32 %v1301_v3, %v293_v36  ;;  %v350_v41 = vsub.f32 %v1301_v3, %v343_v37  ;;  %1021 = vrot.lane.b32.xlu1 %v1020_v35, %s1194_s10  ;;  %v1201_v36 = vmov 0  }
  0xb2   : > { %1075 = vset.pattern.permute.xlu0 %v1201_v36 }
  0xb3   : > { %v385_v42 = vpop.permute.xlu0 %384  ;;  %v387_v43 = vpop.permute.xlu1 %386  ;;  %v1030_v44 = vpack.i.bf16 %v353_v39, %v350_v41  ;;  %v1025_v45 = vpack.i.bf16 %v303_v38, %v300_v40  ;;  %v601_v39 = vld [vmem:[%s1463_s2] sm:$0xff] }
  0xb4   : > { %v393_v46 = vsel %vm392_vm3, %v385_v42, %v387_v43  ;;  %v400_v5 = vsub.f32 %v1301_v3, %v385_v42 }
  0xb5   : > { %1031 = vrot.lane.b32.xlu1 %v1030_v44, %s1194_s10  ;;  %1026 = vrot.lane.b32.xlu0 %v1025_v45, %s1193_s9  ;;  %v401_v50 = vsub.f32 %v1295_v1, %v393_v46  ;;  %s1100_s9 = scalar_lea.vmem %s1411_s5, 384  ;;  %s1202_s10 = smov [#allocation5]  }
  0xb6   : > { %p1101_p11 = scmp.ne.s32.totalorder %s1411_s5, %s1100_s9 }
  0xb7   : > { %v389_v47 = vpop.permute.xlu0 %388  ;;  %v435_v48 = vpop.permute.xlu1 %434 }
  0xb8   : > { %v394_v49 = vsel %vm392_vm3, %v387_v43, %v389_v47  ;;  %v450_v6 = vsub.f32 %v1301_v3, %v435_v48  ;;  %p1102_p12 = pnand %p1101_p11, %p1263_p4 }
  0xb9   : > { %v402_v51 = vsub.f32 %v1299_v2, %v394_v49 }
  0xba   : > { %p1103_p13 = pneg %p1102_p12 }
  0xbb   : > { %v437_v52 = vpop.permute.xlu0 %436  ;;  %v439_v53 = vpop.permute.xlu1 %438  ;;  %v1035_v54 = vpack.i.bf16 %v402_v51, %v401_v50 }
  0xbc   : > { %v443_v55 = vsel %vm442_vm4, %v435_v48, %v437_v52  ;;  %v444_v56 = vsel %vm442_vm4, %v437_v52, %v439_v53 }
  0xbd   : > { %v451_v57 = vsub.f32 %v1295_v1, %v443_v55  ;;  %v452_v58 = vsub.f32 %v1299_v2, %v444_v56  ;;  %1036 = vrot.lane.b32.xlu0 %v1035_v54, %s1195_s11 }
  0xbf   : > { %v391_v59 = vpop.permute.xlu0 %390  ;;  %v441_v60 = vpop.permute.xlu1 %440  ;;  %v1040_v61 = vpack.i.bf16 %v452_v58, %v451_v57 }
  0xc0   : > { %v395_v62 = vsel %vm392_vm3, %v389_v47, %v391_v59  ;;  %v445_v63 = vsel %vm442_vm4, %v439_v53, %v441_v60 }
  0xc1   : > { %v403_v7 = vsub.f32 %v1293_v0, %v395_v62  ;;  %v453_v8 = vsub.f32 %v1293_v0, %v445_v63  ;;  %1041 = vrot.lane.b32.xlu1 %v1040_v61, %s1196_s18 }
  0xc3   : > { %v485_v9 = vpop.permute.xlu0 %484  ;;  %v487_v10 = vpop.permute.xlu1 %486  ;;  %v1050_v11 = vpack.i.bf16 %v453_v8, %v450_v6  ;;  %v1045_v12 = vpack.i.bf16 %v403_v7, %v400_v5 }
  0xc4   : > { %v493_v13 = vsel %vm492_vm5, %v485_v9, %v487_v10  ;;  %v500_v30 = vsub.f32 %v1301_v3, %v485_v9 }
  0xc5   : > { %1051 = vrot.lane.b32.xlu1 %v1050_v11, %s1196_s18  ;;  %1046 = vrot.lane.b32.xlu0 %v1045_v12, %s1195_s11  ;;  %v501_v17 = vsub.f32 %v1295_v1, %v493_v13  ;;  %s1104_s11 = sshll.u32 %s1202_s10, 4  ;;  %s1105_s11 = int_to_ptr.vmem [resolvable:$false] %s1104_s11 }
  0xc6   : > { %s1106_s18 = scalar_lea.vmem %s1105_s11, 768  ;;  %p1107_p0 = scmp.lt.s32.totalorder %s1411_s5, %s1105_s11 }
  0xc7   : > { %v489_v14 = vpop.permute.xlu0 %488  ;;  %v535_v15 = vpop.permute.xlu1 %534  ;;  %p1108_p1 = scmp.lt.s32.totalorder %s1106_s18, %s1100_s9 }
  0xc8   : > { %v494_v16 = vsel %vm492_vm5, %v487_v10, %v489_v14  ;;  %v550_v33 = vsub.f32 %v1301_v3, %v535_v15 }
  0xc9   : > { %v502_v18 = vsub.f32 %v1299_v2, %v494_v16  ;;  %p1109_p2 = por %p1108_p1, %p1107_p0 }
  0xcb   : > { %v537_v19 = vpop.permute.xlu0 %536  ;;  %v539_v20 = vpop.permute.xlu1 %538  ;;  %v1055_v21 = vpack.i.bf16 %v502_v18, %v501_v17  ;;  %p1110_p3 = pnand %p1109_p2, %p1103_p13 }
  0xcc   : > { %v543_v22 = vsel %vm542_vm6, %v535_v15, %v537_v19  ;;  %v544_v23 = vsel %vm542_vm6, %v537_v19, %v539_v20 }
  0xcd   : > { %v551_v24 = vsub.f32 %v1295_v1, %v543_v22  ;;  %v552_v25 = vsub.f32 %v1299_v2, %v544_v23  ;;  %1056 = vrot.lane.b32.xlu0 %v1055_v21, %s1197_s19 }
  0xcf   : > { %v491_v27 = vpop.permute.xlu0 %490  ;;  %v541_v28 = vpop.permute.xlu1 %540  ;;  %v1060_v29 = vpack.i.bf16 %v552_v25, %v551_v24 }
  0xd0   : > { %v495_v31 = vsel %vm492_vm5, %v489_v14, %v491_v27  ;;  %v545_v32 = vsel %vm542_vm6, %v539_v20, %v541_v28 }
  0xd1   : > { %v503_v34 = vsub.f32 %v1293_v0, %v495_v31  ;;  %v553_v35 = vsub.f32 %v1293_v0, %v545_v32  ;;  %1061 = vrot.lane.b32.xlu1 %v1060_v29, %s1200_s21 }
  0xd3   : > { %v1070_v37 = vpack.i.bf16 %v553_v35, %v550_v33  ;;  %v1065_v38 = vpack.i.bf16 %v503_v34, %v500_v30  ;;  %v210_v40 = vpop.permute.xlu1 %209  ;;  %v208_v41 = vpop.permute.xlu0 %207 }
  0xd4   : > { %v215_v44 = vsel %vm213_vm8, %v208_v41, %v210_v40 }
  0xd5   : > { %1071 = vrot.lane.b32.xlu1 %v1070_v37, %s1200_s21  ;;  %1066 = vrot.lane.b32.xlu0 %v1065_v38, %s1197_s19  ;;  %v221_v50 = vsub.f32 %v1295_v1, %v215_v44 }
  0xd7   : > { %v212_v42 = vpop.permute.xlu1 %211  ;;  %v206_v43 = vpop.permute.xlu0 %205 }
  0xd8   : > { %v216_v0 = vsel %vm213_vm8, %v210_v40, %v212_v42  ;;  %v214_v45 = vsel %vm213_vm8, %v206_v43, %v208_v41 }
  0xd9   : > { %604 = vperm.xlu0 %1075, %v601_v39   ;;  %v222_v46 = vsub.f32 %v1299_v2, %v216_v0  ;;  %v220_v47 = vsub.f32 %v1301_v3, %v214_v45 }
 0x117   : > { %v1012_v48 = vpop.permute.xlu1 %1011  ;;  %v1007_v49 = vpop.permute.xlu0 %1006 }
 0x118   : > { %v1014_v51 = vunpack.i.h.bf16 %v1012_v48  ;;  %v1013_v52 = vunpack.i.l.bf16 %v1012_v48  ;;  %v1009_v53 = vunpack.i.h.bf16 %v1007_v49  ;;  %v1008_v54 = vunpack.i.l.bf16 %v1007_v49 }
 0x11a   : > { %v268_v55 = vsel %vm266_vm9, %v1008_v54, %v1009_v53  ;;  %v269_v56 = vsel %vm266_vm9, %v1009_v53, %v1014_v51  ;;  %v267_v57 = vsel %vm266_vm9, %v1013_v52, %v1008_v54 }
 0x11b   : > { %v900_v58 = vpack.c.bf16 %v268_v55, %v221_v50  ;;  %v917_v59 = vpack.c.bf16 %v269_v56, %v222_v46  ;;  %v902_v60 = vpack.c.bf16 %v267_v57, %v220_v47 }
 0x11d   : > { %901 = vmatprep.subr.bf16.mxu0 %v900_v58  ;;  %918 = vmatpush3.bf16.msra.mxu1 %v917_v59 }
 0x11e   : > { %903 = vmatpush1.bf16.msra.mxu0 %v902_v60  ;;  %919 = vmatprep.subr.bf16.mxu1 %v1191_v4  ;;  %v576_v60 = vld [vmem:[%s1462_s1] sm:$0xff] }
 0x11f   : > { %v1017_v2 = vpop.permute.xlu0 %1016 }
 0x120   : > { %v1019_v3 = vunpack.i.h.bf16 %v1017_v2  ;;  %v1018_v61 = vunpack.i.l.bf16 %v1017_v2 }
 0x122   : > { %v318_v5 = vsel %vm316_vm10, %v1018_v61, %v1019_v3 }
 0x123   : > { %v1022_v1 = vpop.permute.xlu1 %1021 }
 0x124   : > { %v1024_v62 = vunpack.i.h.bf16 %v1022_v1  ;;  %v1023_v63 = vunpack.i.l.bf16 %v1022_v1 }
 0x126   : > { %v368_v6 = vsel %vm366_vm11, %v1023_v63, %v1024_v62 }
 0x127   : > { %v1032_v7 = vpop.permute.xlu1 %1031  ;;  %v1027_v8 = vpop.permute.xlu0 %1026  ;;  %v904_v9 = vpack.c.bf16 %v368_v6, %v318_v5 }
 0x128   : > { %v1034_v10 = vunpack.i.h.bf16 %v1032_v7  ;;  %v1033_v11 = vunpack.i.l.bf16 %v1032_v7  ;;  %v1029_v12 = vunpack.i.h.bf16 %v1027_v8  ;;  %v1028_v13 = vunpack.i.l.bf16 %v1027_v8 }
 0x129   : > { %905 = vmatprep.subr.bf16.mxu0 %v904_v9 }
 0x12a   : > { %v317_v14 = vsel %vm316_vm10, %v1028_v13, %v1018_v61  ;;  %v367_v15 = vsel %vm366_vm11, %v1033_v11, %v1023_v63  ;;  %v319_v16 = vsel %vm316_vm10, %v1019_v3, %v1029_v12  ;;  %v369_v17 = vsel %vm366_vm11, %v1024_v62, %v1034_v10 }
 0x12b   : > { %v906_v18 = vpack.c.bf16 %v367_v15, %v317_v14  ;;  %v920_v19 = vpack.c.bf16 %v369_v17, %v319_v16 }
 0x12d   : > { %907 = vmatpush1.bf16.msra.mxu0 %v906_v18  ;;  %921 = vmatpush3.bf16.msra.mxu1 %v920_v19 }
 0x12e   : > { %922 = vmatprep.subr.bf16.mxu1 %v1191_v4 }
 0x12f   : > { %v1037_v20 = vpop.permute.xlu0 %1036 }
 0x130   : > { %v1039_v21 = vunpack.i.h.bf16 %v1037_v20  ;;  %v1038_v22 = vunpack.i.l.bf16 %v1037_v20 }
 0x132   : > { %v418_v26 = vsel %vm416_vm12, %v1038_v22, %v1039_v21 }
 0x133   : > { %v1042_v23 = vpop.permute.xlu1 %1041 }
 0x134   : > { %v1044_v24 = vunpack.i.h.bf16 %v1042_v23  ;;  %v1043_v25 = vunpack.i.l.bf16 %v1042_v23 }
 0x136   : > { %v468_v27 = vsel %vm466_vm13, %v1043_v25, %v1044_v24 }
 0x137   : > { %v1052_v28 = vpop.permute.xlu1 %1051  ;;  %v1047_v29 = vpop.permute.xlu0 %1046  ;;  %v908_v30 = vpack.c.bf16 %v468_v27, %v418_v26 }
 0x138   : > { %v1054_v31 = vunpack.i.h.bf16 %v1052_v28  ;;  %v1053_v32 = vunpack.i.l.bf16 %v1052_v28  ;;  %v1049_v33 = vunpack.i.h.bf16 %v1047_v29  ;;  %v1048_v34 = vunpack.i.l.bf16 %v1047_v29 }
 0x139   : > { %909 = vmatprep.subr.bf16.mxu0 %v908_v30 }
 0x13a   : > { %v417_v35 = vsel %vm416_vm12, %v1048_v34, %v1038_v22  ;;  %v467_v36 = vsel %vm466_vm13, %v1053_v32, %v1043_v25  ;;  %v419_v37 = vsel %vm416_vm12, %v1039_v21, %v1049_v33  ;;  %v469_v38 = vsel %vm466_vm13, %v1044_v24, %v1054_v31 }
 0x13b   : > { %v910_v39 = vpack.c.bf16 %v467_v36, %v417_v35  ;;  %v923_v40 = vpack.c.bf16 %v469_v38, %v419_v37 }
 0x13d   : > { %911 = vmatpush1.bf16.msra.mxu0 %v910_v39  ;;  %924 = vmatpush3.bf16.msra.mxu1 %v923_v40 }
 0x13e   : > { %925 = vmatprep.subr.bf16.mxu1 %v1191_v4 }
 0x13f   : > { %v1057_v41 = vpop.permute.xlu0 %1056 }
 0x140   : > { %v1059_v42 = vunpack.i.h.bf16 %v1057_v41  ;;  %v1058_v43 = vunpack.i.l.bf16 %v1057_v41 }
 0x142   : > { %v518_v46 = vsel %vm516_vm14, %v1058_v43, %v1059_v42 }
 0x143   : > { %v1062_v44 = vpop.permute.xlu1 %1061 }
 0x144   : > { %v1064_v0 = vunpack.i.h.bf16 %v1062_v44  ;;  %v1063_v45 = vunpack.i.l.bf16 %v1062_v44 }
 0x146   : > { %v568_v47 = vsel %vm566_vm15, %v1063_v45, %v1064_v0 }
 0x147   : > { %v1072_v48 = vpop.permute.xlu1 %1071  ;;  %v1067_v49 = vpop.permute.xlu0 %1066  ;;  %v912_v50 = vpack.c.bf16 %v568_v47, %v518_v46 }
 0x148   : > { %v1074_v51 = vunpack.i.h.bf16 %v1072_v48  ;;  %v1073_v52 = vunpack.i.l.bf16 %v1072_v48  ;;  %v1069_v53 = vunpack.i.h.bf16 %v1067_v49  ;;  %v1068_v4 = vunpack.i.l.bf16 %v1067_v49 }
 0x149   : > { %913 = vmatprep.subr.bf16.mxu0 %v912_v50 }
 0x14a   : > { %v517_v54 = vsel %vm516_vm14, %v1068_v4, %v1058_v43  ;;  %v567_v55 = vsel %vm566_vm15, %v1073_v52, %v1063_v45  ;;  %v519_v56 = vsel %vm516_vm14, %v1059_v42, %v1069_v53  ;;  %v569_v57 = vsel %vm566_vm15, %v1064_v0, %v1074_v51 }
 0x14b   : > { %v914_v58 = vpack.c.bf16 %v567_v55, %v517_v54  ;;  %v926_v59 = vpack.c.bf16 %v569_v57, %v519_v56 }
 0x14d   : > { %915 = vmatpush1.bf16.msra.mxu0 %v914_v58  ;;  %927 = vmatpush3.bf16.msra.mxu1 %v926_v59 }
 0x150   : > { %862 = vmatmul.mubr.msk.f32.vlgmr.msra.gmra.mrb[0].mxu0 %vm607_vm0, %v576_v60  ;;  %898 = vmatmul.mubr.msk.f32.vlgmr.msra.gmra.mrb[0].mxu1 %vm607_vm0, %v576_v60 }
 0x158   : > { %v605_v2 = vpop.permute.xlu0 %604 }
 0x223   : > { %v677_v3 = vpop.f32.mrb[0].mxu0  ;;  %v748_v61 = vpop.f32.mrb[0].mxu1 }
 0x224   : > { %v678_v1 = vadd.f32 %v677_v3, %v605_v2  ;;  %v749_v62 = vadd.f32 %v748_v61, %v605_v2  ;;  %v679_v63 = vpop.f32.mrb[1].mxu0  ;;  %v899_v5 = vpop.f32.mrb[1].mxu1 }
 0x225   : > { %v680_v6 = vadd.f32 %v679_v63, %v605_v2 }
 0x226   : > { %752 = vst [vmem:[%s1291_s23] sm:$0xff] %v678_v1  ;;  %754 = vst [vmem:[%s1291_s23 + $0x10] sm:$0xff] %v749_v62 }
 0x227   : > { %753 = vst [vmem:[%s1291_s23 + $0x8] sm:$0xff] %v680_v6 }
 0x228   : > { %1113 = shalt.err (!%p1110_p3)
}
 0x229   : > { %s1114_s26 = scalar_lea.hbm %s1409_s8, 384  ;;  %s1118_s21 = scalar_lea.hbm %s1464_s3, 768 }
 0x22a   : > { %p1115_p5 = scmp.ne.s32.totalorder %s1409_s8, %s1114_s26  ;;  %p1119_p9 = scmp.lt.u32.totalorder %s1409_s8, %s1464_s3 }
 0x22b   : > { %p1120_p10 = scmp.lt.u32.totalorder %s1118_s21, %s1114_s26  ;;  %p1122_p12 = scmp.lt.u32.totalorder %s1114_s26, %s1409_s8 }
 0x22c   : > { %p1116_p6 = pnand %p1115_p5, %p1263_p4 }
 0x22d   : > { %p1121_p11 = por %p1120_p10, %p1119_p9 }
 0x22e   : > { %p1117_p7 = pneg %p1116_p6 }
 0x22f   : > { %p1123_p13 = por %p1122_p12, %p1121_p11 }
 0x231   : > { %p1124_p0 = pnand %p1123_p13, %p1117_p7 }
 0x233   : > { %1127 = shalt.err (!%p1124_p0)
}
 0x234   : > { %930 = dma.vmem_to_hbm [thread:$0]  (%p1263_p4), %s1411_s5, 384, %s1409_s8, %s756_s15  }
 0x235 PF: > { %p936_p1 = scmp.ge.s32.totalorder %s1180_s17, 2  ;;  %s784_s29 = sand.u32 1, %s1160_s12  }
 0x236   : > { %s785_s30 = scalar_lea.sflag [#allocation6], %s784_s29 }
 0x237   : > { %p933_p2 = pnand %p936_p1, %p1270_p8 }
 0x239   : > { %1155 = dma.done.wait (!%p933_p2), %s785_s30, 384  }
 0x23a   : > { %1157 = vsyncadd (!%p933_p2), %s785_s30, 4294966912  ;;  %s16_s17 = sadd.s32 1, %s1180_s17   ;;  %s1467_s12 = smov %s1164_s13 }
 0x23b   : > { %p13_p3 = scmp.ge.s32.totalorder %s16_s17, 4   ;;  %s1468_s13 = smov %s1168_s14 }
 0x23c   : > { %s1469_s14 = smov %s1276_s25  ;;  %s1470_s15 = smov %s1176_s16 }
 0x23d   : > { %s1471_s16 = smov %s1473_s20  ;;  %15 = sbr.rel (!%p13_p3) target bundleno = 4 (0x4), region = 83 }
 0x244   :  { %790 = vsyncpa [#allocation6], 1 }
 0x245   :  { %792 = vsyncpa [#allocation6 + $0x1], 1 }
 0x246   :  { %793 = vsyncmov [#allocation3] }
 0x249   :  { %s794_s22 = vpop.sfrf %793 }
 0x24a   :  { %p867_p4 = scmp.ne.s32.totalorder %s794_s22, 0 }
 0x24c   :  { %798 = shalt.err (%p867_p4)  }
 0x24d   :  { %800 = vsyncmov [#allocation3 + $0x1] }
 0x250   :  { %s801_s24 = vpop.sfrf %800 }
 0x251   :  { %p868_p8 = scmp.ne.s32.totalorder %s801_s24, 0 }
 0x253   :  { %805 = shalt.err (%p868_p8)  }

</bundles_post_ra>
